<compile_context>
chip_gen: v6e
topology: v6e:2x2x1
jax: 0.10.0
libtpu: 0.0.40
codegen_flags: <defaults>
</compile_context>

<pallas_src>
import numpy as np
import jax
import jax.numpy as jnp
from jax.experimental import pallas as pl
from jax.experimental.pallas import tpu as pltpu


# ---------------------------------------------------------------------------
# Tiling / VMEM budgeting
# ---------------------------------------------------------------------------
def _vmem_estimate(bblk, kc, N, C, Cout, gather_bytes, w_bytes):
    """Rough per-grid-step VMEM footprint in bytes (double-buffered operands)."""
    f32 = 4
    idx = 2 * bblk * kc * N * 4 * 2            # two lane-dense idx blocks, 2x buffered
    x = bblk * N * C * f32 * 2                 # x block (resident across k)
    w = 2 * C * Cout * w_bytes * 2
    bia = Cout * f32 * 2
    out = bblk * N * Cout * f32 * 2
    sel = bblk * kc * N * N * gather_bytes     # signed one-hot for this chunk
    gath = bblk * kc * N * C * f32             # gathered chunk
    acc = bblk * N * C * f32                   # running-max scratch
    conv = bblk * N * 2 * C * f32              # conv temporaries / concat
    return idx + x + w + bia + out + sel + gath + acc + conv


def _choose_tiling(B, K, N, C, Cout, gather_bytes, w_bytes, budget):
    """Pick (bblk, k_chunk).  bblk <= 4 (fits v7x 64 MiB VMEM), preferring
    >= 2 blocks on the parallel axis so both v7x TensorCores get work; k_chunk
    is the largest divisor of K whose footprint fits the budget."""
    cands = [d for d in range(min(B, 4), 0, -1) if B % d == 0]
    pref = [d for d in cands if B // d >= 2] or cands
    rest = [d for d in cands if d not in pref]
    k_divs = [d for d in range(K, 0, -1) if K % d == 0]
    for bblk in pref + rest:
        for kc in k_divs:
            if _vmem_estimate(bblk, kc, N, C, Cout, gather_bytes, w_bytes) <= budget:
                return bblk, kc
    return 1, 1


def _concrete_center_check(edge_index, N):
    """Returns True/False if edge_index is concrete, None if traced."""
    try:
        ctr = np.asarray(edge_index[1])
    except Exception:
        return None
    return bool(np.all(ctr == np.arange(N).reshape(1, N, 1)))


# ---------------------------------------------------------------------------
# Kernel
# ---------------------------------------------------------------------------
def _make_kernel(center_is_self, gather_dtype, conv_dtype, fuse_conv):
    g_prec = (jax.lax.Precision.HIGHEST if gather_dtype == jnp.float32
              else jax.lax.Precision.DEFAULT)
    c_prec = (jax.lax.Precision.HIGHEST if conv_dtype == jnp.float32
              else jax.lax.Precision.DEFAULT)

    def body(idxj_ref, idxi_ref, x_ref, w_ref, b_ref, o_ref, acc_ref):
        # idxj_ref/idxi_ref: (Bblk, Kc, 1, N) int32, lane-dense (N on lanes)
        # x_ref:             (Bblk, N, C)  f32, channels-last (resident over k)
        # w_ref:             (2C, Cout)    conv weight rows [x ; x_j_max]
        # b_ref:             (1, Cout)     f32
        # o_ref:             (Bblk, N, Cout) f32
        # acc_ref:           (Bblk, N, C)  f32 running max over K chunks
        k_step = pl.program_id(1)
        xb = x_ref[...]
        Bblk, N, C = xb.shape
        Kc = idxj_ref.shape[1]
        Cout = w_ref.shape[1]

        # Signed one-hot selection for this K-chunk.  Indices arrive lane-dense;
        # the broadcast against the lane iota is one small relayout of Kc*N ints.
        cols = jax.lax.broadcasted_iota(jnp.int32, (Bblk, Kc, N, N), 3)
        idx_j = idxj_ref[:, :, 0, :]                           # (Bblk, Kc, N)
        sel = (cols == idx_j[..., None]).astype(gather_dtype)  # (Bblk, Kc, N, N)
        if not center_is_self:
            idx_i = idxi_ref[:, :, 0, :]
            sel = sel - (cols == idx_i[..., None]).astype(gather_dtype)
        sel = sel.reshape(Bblk, Kc * N, N)

        # One MXU matmul per chunk performs the whole gather (sel entries are
        # {+1,-1,0}; exact in f32/HIGHEST and exact-by-construction in bf16 on
        # the sel side).
        xg = xb.astype(gather_dtype)
        gath = jnp.einsum('bmn,bnc->bmc', sel, xg, precision=g_prec,
                          preferred_element_type=jnp.float32)  # (Bblk, Kc*N, C)
        rel_chunk = jnp.max(gath.reshape(Bblk, Kc, N, C), axis=1)  # (Bblk, N, C)

        # Running max over K chunks.
        @pl.when(k_step == 0)
        def _():
            acc_ref[...] = rel_chunk

        @pl.when(k_step > 0)
        def _():
            acc_ref[...] = jnp.maximum(acc_ref[...], rel_chunk)

        # Last chunk: 1x1 conv (+ bias) + ReLU, store the output block.
        @pl.when(k_step == pl.num_programs(1) - 1)
        def _():
            rel = acc_ref[...]
            if center_is_self:
                rel = rel - xb                    # max_k(x_j) - x_i (x_i == x)
            xc = xb.astype(conv_dtype)
            rc = rel.astype(conv_dtype)
            if fuse_conv:
                # Single (Bblk*N, 2C) @ (2C, Cout) matmul (C % 128 == 0: the
                # lane concat is free and the MXU contraction depth doubles).
                xin = jnp.concatenate([xc, rc], axis=-1).reshape(Bblk * N, 2 * C)
                out = jnp.dot(xin, w_ref[...], precision=c_prec,
                              preferred_element_type=jnp.float32)
            else:
                out = (jnp.dot(xc.reshape(Bblk * N, C), w_ref[:C, :],
                               precision=c_prec, preferred_element_type=jnp.float32)
                       + jnp.dot(rc.reshape(Bblk * N, C), w_ref[C:, :],
                                 precision=c_prec, preferred_element_type=jnp.float32))
            out = jnp.maximum(out + b_ref[...], 0.0)
            o_ref[...] = out.reshape(Bblk, N, Cout).astype(o_ref.dtype)

    if center_is_self:
        def kernel(idxj_ref, x_ref, w_ref, b_ref, o_ref, acc_ref):
            body(idxj_ref, None, x_ref, w_ref, b_ref, o_ref, acc_ref)
    else:
        def kernel(idxj_ref, idxi_ref, x_ref, w_ref, b_ref, o_ref, acc_ref):
            body(idxj_ref, idxi_ref, x_ref, w_ref, b_ref, o_ref, acc_ref)
    return kernel


# ---------------------------------------------------------------------------
# Wrapper
# ---------------------------------------------------------------------------
def mrconv2d(x_nchw, edge_index, W, bias, *, center_is_self=None,
             use_bf16_conv=False, use_bf16_gather=None,
             bblk=None, k_chunk=None, vmem_budget_bytes=40 * 1024 * 1024):
    """x_nchw: (B, C, N, 1), edge_index: (2, B, N, K), W: (2C, Cout), bias: (Cout,).

    center_is_self: True when edge_index[1] is the center vertex repeated over
                    K (standard dense kNN); auto-detected when None and the
                    indices are concrete.
    use_bf16_conv / use_bf16_gather: run the conv / gather matmuls in bf16
                    with f32 accumulation (v6e/v7x MXU throughput).
    """
    B, C, N, w1 = x_nchw.shape
    assert w1 == 1
    assert edge_index.shape[0] == 2 and edge_index.shape[1] == B
    assert edge_index.shape[2] == N
    K = edge_index.shape[-1]
    Cout = W.shape[1]
    assert W.shape[0] == 2 * C and K >= 1

    if use_bf16_gather is None:
        use_bf16_gather = use_bf16_conv
    gather_dtype = jnp.bfloat16 if use_bf16_gather else jnp.float32
    conv_dtype = jnp.bfloat16 if use_bf16_conv else jnp.float32

    # Auto-detect / validate the dense-kNN case (skips the x_i one-hot).
    if center_is_self is None:
        chk = _concrete_center_check(edge_index, N)
        center_is_self = bool(chk) if chk is not None else False
    elif center_is_self:
        chk = _concrete_center_check(edge_index, N)
        if chk is not None:
            assert chk, ("center_is_self=True but edge_index[1] is not the "
                         "repeated center vertex")

    # Lane-dense neighbor indices: (B, N, K) -> (B, K, 1, N), clamped into
    # range (PyTorch indexing would raise on OOB; we clamp instead of silently
    # gathering garbage).
    def prep_idx(idx):
        idx = jnp.clip(idx.astype(jnp.int32), 0, N - 1)
        return jnp.transpose(idx, (0, 2, 1))[:, :, None, :]

    idxj = prep_idx(edge_index[0])
    idxi = None if center_is_self else prep_idx(edge_index[1])

    # Channels-last activations (vertices on sublanes, channels on lanes).
    # TODO(synk): in a ViG stack keep activations as (B, N, C) between layers
    # and drop this transpose + the output transpose (extra HBM round trips).
    x_nlc = jnp.transpose(x_nchw[..., 0], (0, 2, 1)).astype(jnp.float32)

    Wk = W.astype(conv_dtype)                     # pre-cast once in the wrapper
    bias2d = bias.reshape(1, Cout).astype(jnp.float32)

    g_bytes = 2 if use_bf16_gather else 4
    w_bytes = 2 if use_bf16_conv else 4
    auto_bblk, auto_kc = _choose_tiling(B, K, N, C, Cout, g_bytes, w_bytes,
                                        vmem_budget_bytes)
    bblk = auto_bblk if bblk is None else bblk
    kc = auto_kc if k_chunk is None else k_chunk
    assert B % bblk == 0 and K % kc == 0

    est = _vmem_estimate(bblk, kc, N, C, Cout, g_bytes, w_bytes)
    vmem_limit = int(min(64 * 1024 * 1024,
                         max(32 * 1024 * 1024, 1.5 * est + (4 << 20))))

    fuse_conv = (C % 128 == 0)
    kernel = _make_kernel(center_is_self, gather_dtype, conv_dtype, fuse_conv)

    idx_spec = pl.BlockSpec((bblk, kc, 1, N), lambda b, k: (b, k, 0, 0))
    in_specs = [idx_spec]
    args = [idxj]
    if not center_is_self:
        in_specs.append(idx_spec)
        args.append(idxi)
    in_specs += [
        pl.BlockSpec((bblk, N, C), lambda b, k: (b, 0, 0)),      # x: resident over k
        pl.BlockSpec((2 * C, Cout), lambda b, k: (0, 0)),
        pl.BlockSpec((1, Cout), lambda b, k: (0, 0)),
    ]
    args += [x_nlc, Wk, bias2d]

    flops = 2 * B * K * N * N * C + 4 * B * N * C * Cout
    idx_bytes = idxj.size * 4 + (0 if center_is_self else idxi.size * 4)
    bytes_accessed = (x_nlc.size * 4 + idx_bytes + Wk.size * w_bytes
                      + Cout * 4 + B * N * Cout * 4)

    out_nlc = pl.pallas_call(
        kernel,
        out_shape=jax.ShapeDtypeStruct((B, N, Cout), jnp.float32),
        grid_spec=pltpu.PrefetchScalarGridSpec(
            num_scalar_prefetch=0,
            grid=(B // bblk, K // kc),
            in_specs=in_specs,
            out_specs=pl.BlockSpec((bblk, N, Cout), lambda b, k: (b, 0, 0)),
            scratch_shapes=[pltpu.VMEM((bblk, N, C), jnp.float32)],
        ),
        compiler_params=pltpu.CompilerParams(
            dimension_semantics=("parallel", "arbitrary"),
            vmem_limit_bytes=vmem_limit),
        cost_estimate=pl.CostEstimate(flops=flops, transcendentals=0,
                                      bytes_accessed=bytes_accessed),
    )(*args)

    # Back to PyTorch NCHW: (B, Cout, N, 1).
    return jnp.transpose(out_nlc, (0, 2, 1))[..., None]


# ---------------------------------------------------------------------------
# Pure-JAX reference (matches the PyTorch forward exactly)
# ---------------------------------------------------------------------------
def mrconv2d_ref(x_nchw, edge_index, W, bias):
    x = x_nchw[..., 0]                                       # (B, C, N)
    idx0 = edge_index[0]                                     # (B, N, K)
    idx1 = edge_index[1]

    def gather(xb, idxb):                                    # xb (C, N), idxb (N, K)
        return xb[:, idxb]                                   # (C, N, K)

    x_j = jax.vmap(gather)(x, idx0)
    x_i = jax.vmap(gather)(x, idx1)
    xm = jnp.max(x_j - x_i, axis=-1)                         # (B, C, N)
    cat = jnp.concatenate([x, xm], axis=1)                   # (B, 2C, N)
    out = jnp.einsum('co,bcn->bon', W, cat,
                     precision=jax.lax.Precision.HIGHEST) + bias[None, :, None]
    return jnp.maximum(out, 0.0)[..., None]                  # (B, Cout, N, 1)


# ---------------------------------------------------------------------------
# Self-test
# ---------------------------------------------------------------------------
if __name__ == "__main__":
    def run_case(key, B, C_in, C_out, N, K, dense_center, tol, **kw):
        kx, ki, kw_, kb = jax.random.split(key, 4)
        x = jax.random.normal(kx, (B, C_in, N, 1), dtype=jnp.float32)

        nbr = jax.random.randint(ki, (B, N, K), 0, N, dtype=jnp.int32)
        if dense_center:
            ctr = jnp.broadcast_to(jnp.arange(N, dtype=jnp.int32)[None, :, None],
                                   (B, N, K))
        else:
            ctr = jax.random.randint(jax.random.fold_in(ki, 1), (B, N, K), 0, N,
                                     dtype=jnp.int32)
        edge_index = jnp.stack([nbr, ctr], axis=0)            # (2, B, N, K)

        # 1x1 conv params: PyTorch weight (Cout, 2C, 1, 1) stored as (2C, Cout)
        W = (jax.random.normal(kw_, (2 * C_in, C_out), dtype=jnp.float32)
             / jnp.sqrt(2.0 * C_in))
        bias = jax.random.normal(kb, (C_out,), dtype=jnp.float32) * 0.1

        ref = jax.block_until_ready(mrconv2d_ref(x, edge_index, W, bias))
        out = jax.block_until_ready(mrconv2d(x, edge_index, W, bias, **kw))
        assert out.shape == (B, C_out, N, 1), out.shape
        np.testing.assert_allclose(np.asarray(out), np.asarray(ref),
                                   rtol=tol, atol=tol)

    key = jax.random.PRNGKey(0)
    ks = jax.random.split(key, 6)

    # 1) Dense-kNN (auto-detected center_is_self), exact f32, auto tiling.
    run_case(ks[0], B=2, C_in=4, C_out=8, N=16, K=8, dense_center=True, tol=1e-5)
    # 2) General signed-selection path (random centers), exact f32.
    run_case(ks[1], B=2, C_in=4, C_out=8, N=16, K=8, dense_center=False, tol=1e-5)
    # 3) K-chunking across grid steps (running-max accumulator), center path.
    run_case(ks[2], B=2, C_in=4, C_out=8, N=16, K=8, dense_center=True, tol=1e-5,
             k_chunk=2, bblk=1)
    # 4) K-chunking on the general path.
    run_case(ks[3], B=2, C_in=4, C_out=8, N=16, K=8, dense_center=False, tol=1e-5,
             k_chunk=2, bblk=1)
    # 5) bf16 gather + conv matmuls (v6e/v7x MXU path), loose tolerance.
    run_case(ks[4], B=2, C_in=4, C_out=8, N=16, K=8, dense_center=True, tol=5e-2,
             use_bf16_conv=True)
    # 6) C % 128 == 0: fused single (bblk*N, 2C) @ (2C, Cout) conv matmul.
    run_case(ks[5], B=2, C_in=128, C_out=256, N=16, K=8, dense_center=True,
             tol=1e-4)

    print("KERNEL_OK")
</pallas_src>

<mosaic_0001>
module attributes {stable_mosaic.version = 11 : i64} {
  func.func @kernel(%arg0: i32, %arg1: i32, %arg2: memref<1x8x1x16xi32, #tpu.memory_space<vmem>>, %arg3: memref<1x16x4xf32, #tpu.memory_space<vmem>>, %arg4: memref<8x8xf32, #tpu.memory_space<vmem>>, %arg5: memref<1x8xf32, #tpu.memory_space<vmem>>, %arg6: memref<1x16x8xf32, #tpu.memory_space<vmem>>, %arg7: memref<1x16x4xf32, #tpu.memory_space<vmem>>) attributes {dimension_semantics = [#tpu.dimension_semantics<parallel>, #tpu.dimension_semantics<arbitrary>], iteration_bounds = array<i64: 2, 1>, scalar_prefetch = 0 : i64, scratch_operands = 1 : i64, tpu.core_type = #tpu.core_type<tc>, window_params = [{transform_indices = @transform_0, window_bounds = array<i64: 1, 8, 1, 16>}, {transform_indices = @transform_1, window_bounds = array<i64: 1, 16, 4>}, {pipeline_mode = #tpu.pipeline_mode<synchronous>, transform_indices = @transform_2, window_bounds = array<i64: 8, 8>}, {pipeline_mode = #tpu.pipeline_mode<synchronous>, transform_indices = @transform_3, window_bounds = array<i64: 1, 8>}, {transform_indices = @transform_4, window_bounds = array<i64: 1, 16, 8>}]} {
    %c0 = arith.constant 0 : index
    %c0_0 = arith.constant 0 : index
    %c0_1 = arith.constant 0 : index
    %0 = vector.load %arg3[%c0, %c0_0, %c0_1] : memref<1x16x4xf32, #tpu.memory_space<vmem>>, vector<1x16x4xf32>
    %1 = tpu.iota {dimensions = array<i32: 3>} : vector<1x8x16x16xi32>
    %c0_2 = arith.constant 0 : index
    %c0_3 = arith.constant 0 : index
    %c0_4 = arith.constant 0 : index
    %c0_5 = arith.constant 0 : index
    %2 = vector.load %arg2[%c0_2, %c0_3, %c0_4, %c0_5] : memref<1x8x1x16xi32, #tpu.memory_space<vmem>>, vector<1x8x1x16xi32>
    %3 = vector.shape_cast %2 : vector<1x8x1x16xi32> to vector<1x8x16xi32>
    %4 = vector.shape_cast %3 : vector<1x8x16xi32> to vector<1x8x16x1xi32>
    %5 = vector.broadcast %4 : vector<1x8x16x1xi32> to vector<1x8x16x16xi32>
    %6 = arith.cmpi eq, %1, %5 : vector<1x8x16x16xi32>
    %7 = arith.extui %6 : vector<1x8x16x16xi1> to vector<1x8x16x16xi32>
    %8 = arith.sitofp %7 : vector<1x8x16x16xi32> to vector<1x8x16x16xf32>
    %9 = vector.shape_cast %8 : vector<1x8x16x16xf32> to vector<1x128x16xf32>
    "tpu.trace_start"() <{level = 10 : i32, message = "bmn,bnc->bmc"}> : () -> ()
    %cst = arith.constant dense<0.000000e+00> : vector<1x128x4xf32>
    %10 = tpu.matmul %9, %0, %cst {dimension_numbers = #tpu.dot_dimension_numbers<[2], [1], [1], [2], [0, 0, 0, 1, 1, 2], [0], [0]>, precision = #tpu.contract_precision<fp32>} : vector<1x128x16xf32>, vector<1x16x4xf32>, vector<1x128x4xf32> -> vector<1x128x4xf32>
    "tpu.trace_stop"() : () -> ()
    %11 = vector.shape_cast %10 : vector<1x128x4xf32> to vector<1x8x16x4xf32>
    %cst_6 = arith.constant dense<0xFF800000> : vector<1x16x4xf32>
    %12 = vector.multi_reduction <maximumf>, %11, %cst_6 [1] : vector<1x8x16x4xf32> to vector<1x16x4xf32>
    %c0_i32 = arith.constant 0 : i32
    %13 = arith.cmpi eq, %arg1, %c0_i32 : i32
    %14 = arith.extui %13 : i1 to i32
    %c0_i32_7 = arith.constant 0 : i32
    %15 = arith.cmpi ne, %14, %c0_i32_7 : i32
    scf.if %15 {
      %c0_12 = arith.constant 0 : index
      %c0_13 = arith.constant 0 : index
      %c0_14 = arith.constant 0 : index
      %22 = vector.load %arg7[%c0_12, %c0_13, %c0_14] : memref<1x16x4xf32, #tpu.memory_space<vmem>>, vector<1x16x4xf32>
      tpu.vector_store %arg7[%c0_12, %c0_13, %c0_14], %12 {strides = array<i32>} : memref<1x16x4xf32, #tpu.memory_space<vmem>>, vector<1x16x4xf32>,
    } else {
    }
    %c0_i32_8 = arith.constant 0 : i32
    %16 = arith.cmpi sgt, %arg1, %c0_i32_8 : i32
    %17 = arith.extui %16 : i1 to i32
    %c0_i32_9 = arith.constant 0 : i32
    %18 = arith.cmpi ne, %17, %c0_i32_9 : i32
    scf.if %18 {
      %c0_12 = arith.constant 0 : index
      %c0_13 = arith.constant 0 : index
      %c0_14 = arith.constant 0 : index
      %22 = vector.load %arg7[%c0_12, %c0_13, %c0_14] : memref<1x16x4xf32, #tpu.memory_space<vmem>>, vector<1x16x4xf32>
      %23 = arith.maximumf %22, %12 : vector<1x16x4xf32>
      %c0_15 = arith.constant 0 : index
      %c0_16 = arith.constant 0 : index
      %c0_17 = arith.constant 0 : index
      %24 = vector.load %arg7[%c0_15, %c0_16, %c0_17] : memref<1x16x4xf32, #tpu.memory_space<vmem>>, vector<1x16x4xf32>
      tpu.vector_store %arg7[%c0_15, %c0_16, %c0_17], %23 {strides = array<i32>} : memref<1x16x4xf32, #tpu.memory_space<vmem>>, vector<1x16x4xf32>,
    } else {
    }
    %c0_i32_10 = arith.constant 0 : i32
    %19 = arith.cmpi eq, %arg1, %c0_i32_10 : i32
    %20 = arith.extui %19 : i1 to i32
    %c0_i32_11 = arith.constant 0 : i32
    %21 = arith.cmpi ne, %20, %c0_i32_11 : i32
    scf.if %21 {
      %c0_12 = arith.constant 0 : index
      %c0_13 = arith.constant 0 : index
      %c0_14 = arith.constant 0 : index
      %22 = vector.load %arg7[%c0_12, %c0_13, %c0_14] : memref<1x16x4xf32, #tpu.memory_space<vmem>>, vector<1x16x4xf32>
      %23 = arith.subf %22, %0 : vector<1x16x4xf32>
      %24 = vector.shape_cast %0 : vector<1x16x4xf32> to vector<16x4xf32>
      %c0_15 = arith.constant 0 : index
      %c0_16 = arith.constant 0 : index
      %25 = vector.load %arg4[%c0_15, %c0_16] : memref<8x8xf32, #tpu.memory_space<vmem>>, vector<4x8xf32>
      %cst_17 = arith.constant dense<0.000000e+00> : vector<16x8xf32>
      %26 = tpu.matmul %24, %25, %cst_17 {dimension_numbers = #tpu.dot_dimension_numbers<[1], [0], [0], [1], [0, 0, 1, 1], [], []>, precision = #tpu.contract_precision<fp32>} : vector<16x4xf32>, vector<4x8xf32>, vector<16x8xf32> -> vector<16x8xf32>
      %27 = vector.shape_cast %23 : vector<1x16x4xf32> to vector<16x4xf32>
      %c4 = arith.constant 4 : index
      %c0_18 = arith.constant 0 : index
      %28 = vector.load %arg4[%c4, %c0_18] : memref<8x8xf32, #tpu.memory_space<vmem>>, vector<4x8xf32>
      %cst_19 = arith.constant dense<0.000000e+00> : vector<16x8xf32>
      %29 = tpu.matmul %27, %28, %cst_19 {dimension_numbers = #tpu.dot_dimension_numbers<[1], [0], [0], [1], [0, 0, 1, 1], [], []>, precision = #tpu.contract_precision<fp32>} : vector<16x4xf32>, vector<4x8xf32>, vector<16x8xf32> -> vector<16x8xf32>
      %30 = arith.addf %26, %29 : vector<16x8xf32>
      %c0_20 = arith.constant 0 : index
      %c0_21 = arith.constant 0 : index
      %31 = vector.load %arg5[%c0_20, %c0_21] : memref<1x8xf32, #tpu.memory_space<vmem>>, vector<1x8xf32>
      %32 = vector.broadcast %31 : vector<1x8xf32> to vector<16x8xf32>
      %33 = arith.addf %30, %32 : vector<16x8xf32>
      %cst_22 = arith.constant 0.000000e+00 : f32
      %34 = vector.broadcast %cst_22 : f32 to vector<16x8xf32>
      %35 = arith.maximumf %33, %34 : vector<16x8xf32>
      %36 = vector.shape_cast %35 : vector<16x8xf32> to vector<1x16x8xf32>
      %c0_23 = arith.constant 0 : index
      %c0_24 = arith.constant 0 : index
      %c0_25 = arith.constant 0 : index
      %37 = vector.load %arg6[%c0_23, %c0_24, %c0_25] : memref<1x16x8xf32, #tpu.memory_space<vmem>>, vector<1x16x8xf32>
      tpu.vector_store %arg6[%c0_23, %c0_24, %c0_25], %36 {strides = array<i32>} : memref<1x16x8xf32, #tpu.memory_space<vmem>>, vector<1x16x8xf32>,
    } else {
    }
    return
  }
  func.func @transform_0(%arg0: i32, %arg1: i32) -> (i32, i32, i32, i32) {
    %c0_i32 = arith.constant 0 : i32
    %c0_i32_0 = arith.constant 0 : i32
    %c0_i32_1 = arith.constant 0 : i32
    return %arg0, %arg1, %c0_i32, %c0_i32_0 : i32, i32, i32, i32
  }
  func.func @transform_1(%arg0: i32, %arg1: i32) -> (i32, i32, i32) {
    %c0_i32 = arith.constant 0 : i32
    %c0_i32_0 = arith.constant 0 : i32
    %c0_i32_1 = arith.constant 0 : i32
    return %arg0, %c0_i32, %c0_i32_0 : i32, i32, i32
  }
  func.func @transform_2(%arg0: i32, %arg1: i32) -> (i32, i32) {
    %c0_i32 = arith.constant 0 : i32
    %c0_i32_0 = arith.constant 0 : i32
    %c0_i32_1 = arith.constant 0 : i32
    return %c0_i32, %c0_i32_0 : i32, i32
  }
  func.func @transform_3(%arg0: i32, %arg1: i32) -> (i32, i32) {
    %c0_i32 = arith.constant 0 : i32
    %c0_i32_0 = arith.constant 0 : i32
    %c0_i32_1 = arith.constant 0 : i32
    return %c0_i32, %c0_i32_0 : i32, i32
  }
  func.func @transform_4(%arg0: i32, %arg1: i32) -> (i32, i32, i32) {
    %c0_i32 = arith.constant 0 : i32
    %c0_i32_0 = arith.constant 0 : i32
    %c0_i32_1 = arith.constant 0 : i32
    return %arg0, %c0_i32, %c0_i32_0 : i32, i32, i32
  }
}

</mosaic_0001>

<bundles_post_ra>
// kernel: tpu_custom_call.1
= control target key start
LH: loop header
LB: loop body
LE: loop exit
PB: predicated region body
PF: predicated region fallthrough
CT: control target
= control target key end

     0   :  { %s3225_s15 = smov 0   ;;  %s3227_s16 = smov 0   ;;  %s3826_s0 = inlined_call_operand.vmem [shape: s32[2,8,1,16], index: 0, kind: input, shape index: {}]   ;;  %s3827_s1 = inlined_call_operand.vmem [shape: f32[2,16,4], index: 1, kind: input, shape index: {}]   ;;  %s3828_s2 = inlined_call_operand.vmem [shape: f32[8,8], index: 2, kind: input, shape index: {}]   ;;  %s3829_s3 = inlined_call_operand.vmem [shape: f32[1,8], index: 3, kind: input, shape index: {}]   ;;  %s3830_s4 = inlined_call_operand.vmem [shape: f32[2,16,8], index: 4, kind: output, shape index: {}]  }
   0x1   :  { %s3229_s17 = smov 0  }
   0x2 LB: > { %s26_s18 = sadd.s32 1, %s3193_s16  ;;  %p2693_p0 = scmp.ge.s32.totalorder %s3197_s17, 1  ;;  %s3197_s17 = sphi %s3229_s17, %s14_s17   ;;  %s3193_s16 = sphi %s3227_s16, %s3866_s16   ;;  %s3189_s15 = sphi %s3225_s15, %s3865_s15  }
   0x3   : > { %p28_p1 = scmp.ge.s32.totalorder %s26_s18, 2  ;;  %p190_p2 = scmp.lt.s32.totalorder %s3197_s17, 3 }
   0x5   : > { %s3868_s18 = smov (%p28_p1, %s26_s18), 0  ;;  %p191_p3 = pnand %p2693_p0, %p190_p2 }
   0x7   : > { %194 = sbr.rel (%p191_p3) target bundleno = 690 (0x2b2), region = 36 }
   0xc   : > { %p225_p4 = scmp.lt.s32.totalorder %s3189_s15, 1  ;;  %v245_v20 = vlaneseq  ;;  %vm391_vm0 = vcmask 130048   ;;  %v3199_v24 = vmov 0.0  }
   0xe   : > { %s3870_s15 = smov (!%p225_p4, %s3189_s15), 1  ;;  %v3299_v21 = vand.u32 127, %v245_v20 }
   0xf   : > { %s2694_s19 = sshll.u32 %s3870_s15, 3  ;;  %s2774_s20 = sshll.u32 %s3870_s15, 4 }
  0x10   : > { %s3250_s23 = scalar_lea.vmem %s3826_s0, %s2694_s19  ;;  %s3259_s26 = scalar_lea.vmem %s3827_s1, %s2774_s20 }
  0x11   : > { %v2699_v0 = vld [vmem:[%s3250_s23] ss:$0 sm:$0xff]  ;;  %v2700_v1 = vld [vmem:[%s3250_s23 + $0x1] ss:$0 sm:$0xff]  ;;  %v3263_v3 = vld [vmem:[%s3259_s26 + $0x8] sm:$0xff]  ;;  %s242_s9 = scalar_lea.vmem %s3830_s4, %s2774_s20 }
  0x12   : > { %260 = vbcast.lane.b32.xlu0 %v2699_v0, 256  ;;  %271 = vbcast.lane.b32.xlu1 %v2700_v1, 256  ;;  %v243_v2 = vld [vmem:[%s3259_s26] sm:$0xff]  ;;  %3837 = vst [vmem:[#allocation3_spill] sm:$0xff] %v3263_v3  ;;  %v3266_v4 = vand.u32 4294901760, %v3263_v3 }
  0x13   : > { %v3268_v5 = vand.u32 4294901760, %v243_v2  ;;  %v2701_v6 = vld [vmem:[%s3250_s23 + $0x2] ss:$0 sm:$0xff]  ;;  %v2702_v11 = vld [vmem:[%s3250_s23 + $0x3] ss:$0 sm:$0xff] }
  0x14   : > { %v3273_v7 = vsub.f32 %v3263_v3, %v3266_v4  ;;  %2920 = vmatprep.subr.mxu0 %v3266_v4  ;;  %v2703_v16 = vld [vmem:[%s3250_s23 + $0x4] ss:$0 sm:$0xff]  ;;  %v2704_v17 = vld [vmem:[%s3250_s23 + $0x5] ss:$0 sm:$0xff]  ;;  %v2705_v18 = vld [vmem:[%s3250_s23 + $0x6] ss:$0 sm:$0xff] }
  0x15   : > { %v3276_v8 = vsub.f32 %v243_v2, %v3268_v5  ;;  %2921 = vmatpush3.msra.mxu0 %v3266_v4  ;;  %v2706_v19 = vld [vmem:[%s3250_s23 + $0x7] ss:$0 sm:$0xff] }
  0x16   : > { %264 = vbcast.lane.b32.xlu0 %v2699_v0, 264  ;;  %275 = vbcast.lane.b32.xlu1 %v2700_v1, 264  ;;  %v3281_v9 = vand.u32 4294901760, %v3273_v7 }
  0x17   : > { %v3284_v10 = vand.u32 4294901760, %v3276_v8  ;;  %2922 = vmatprep.subr.mxu0 %v3268_v5 }
  0x18   : > { %v699_v12 = vsub.f32 %v3273_v7, %v3281_v9  ;;  %2923 = vmatpush3.msra.mxu0 %v3268_v5 }
  0x19   : > { %v706_v13 = vsub.f32 %v3276_v8, %v3284_v10  ;;  %2976 = vmatprep.subr.mxu0 %v3273_v7 }
  0x1a   : > { %282 = vbcast.lane.b32.xlu0 %v2701_v6, 256  ;;  %286 = vbcast.lane.b32.xlu1 %v2701_v6, 264  ;;  %v700_v14 = vand.u32 4294901760, %v699_v12 }
  0x1b   : > { %v707_v15 = vand.u32 4294901760, %v706_v13 }
  0x1c   : > { %2948 = vmatprep.subr.mxu1 %v700_v14 }
  0x1d   : > { %2949 = vmatpush3.msra.mxu1 %v700_v14 }
  0x1e   : > { %293 = vbcast.lane.b32.xlu0 %v2702_v11, 256  ;;  %297 = vbcast.lane.b32.xlu1 %v2702_v11, 264 }
  0x1f   : > { %2950 = vmatprep.subr.mxu1 %v707_v15 }
  0x20   : > { %2951 = vmatpush3.msra.mxu1 %v707_v15 }
  0x21   : > { %3004 = vmatprep.subr.mxu1 %v3266_v4 }
  0x22   : > { %304 = vbcast.lane.b32.xlu0 %v2703_v16, 256  ;;  %308 = vbcast.lane.b32.xlu1 %v2703_v16, 264 }
  0x26   : > { %315 = vbcast.lane.b32.xlu0 %v2704_v17, 256  ;;  %319 = vbcast.lane.b32.xlu1 %v2704_v17, 264 }
  0x2a   : > { %326 = vbcast.lane.b32.xlu0 %v2705_v18, 256  ;;  %330 = vbcast.lane.b32.xlu1 %v2705_v18, 264 }
  0x2e   : > { %337 = vbcast.lane.b32.xlu0 %v2706_v19, 256  ;;  %341 = vbcast.lane.b32.xlu1 %v2706_v19, 264 }
  0x84   : > { %v261_v22 = vpop.permute.xlu0 %260  ;;  %v272_v23 = vpop.permute.xlu1 %271 }
  0x85   : > { %vm343_vm1 = vcmp.eq.s32.totalorder %v3299_v21, %v261_v22  ;;  %vm345_vm2 = vcmp.eq.s32.totalorder %v3299_v21, %v272_v23 }
  0x86   : > { %v3304_v25 = vsel %vm343_vm1, 1.0, %v3199_v24  ;;  %v3307_v26 = vsel %vm345_vm2, 1.0, %v3199_v24  ;;  %vm1606_vm2 = vcmask 1043456  }
  0x87   : > { %v399_v27 = vsel %vm391_vm0, %v3307_v26, 0  ;;  %2952 = vmatprep.mubr.msk.f32.mxu1 %vm391_vm0, %v3304_v25  ;;  %v393_v28 = vsel %vm391_vm0, %v3304_v25, 0 }
  0x88   : > { %v3315_v29 = vsub.f32 %v399_v27, %v399_v27  ;;  %v265_v30 = vpop.permute.xlu0 %264  ;;  %v276_v31 = vpop.permute.xlu1 %275  ;;  %v3317_v32 = vsub.f32 %v393_v28, %v393_v28 }
  0x89   : > { %vm344_vm3 = vcmp.eq.s32.totalorder %v3299_v21, %v265_v30  ;;  %vm346_vm4 = vcmp.eq.s32.totalorder %v3299_v21, %v276_v31 }
  0x8a   : > { %v3322_v33 = vsel %vm344_vm3, 1.0, %v3199_v24  ;;  %v3325_v34 = vsel %vm346_vm4, 1.0, %v3199_v24  ;;  %v509_v35 = vand.u32 4294901760, %v3317_v32  ;;  %v529_v38 = vand.u32 4294901760, %v3315_v29 }
  0x8b   : > { %v396_v36 = vsel %vm391_vm0, %v3322_v33, 0  ;;  %v402_v37 = vsel %vm391_vm0, %v3325_v34, 0  ;;  %2953 = vmatmul.mubr.msk.f32.vlgmr.msra.gmra.mxu1 %vm391_vm0, %v3322_v33  ;;  %vm2608_vm3 = vcmask 64512  }
  0x8c   : > { %v3335_v39 = vsub.f32 %v396_v36, %v396_v36  ;;  %v3337_v40 = vsub.f32 %v402_v37, %v402_v37  ;;  %2955 = vmatprep.mubr.msk.f32.mxu1 %vm391_vm0, %v3307_v26  ;;  %v283_v41 = vpop.permute.xlu0 %282  ;;  %v287_v42 = vpop.permute.xlu1 %286  ;;  %v510_v43 = vsub.f32 %v3317_v32, %v509_v35  ;;  %3005 = vmatpush3.msra.mxu1 %v3266_v4 }
  0x8d   : > { %vm347_vm5 = vcmp.eq.s32.totalorder %v3299_v21, %v283_v41  ;;  %vm348_vm6 = vcmp.eq.s32.totalorder %v3299_v21, %v287_v42  ;;  %3006 = vmatprep.subr.mxu1 %v3268_v5  ;;  %v530_v50 = vsub.f32 %v3315_v29, %v529_v38 }
  0x8e   : > { %v3348_v44 = vsel %vm347_vm5, 1.0, %v3199_v24  ;;  %v3351_v45 = vsel %vm348_vm6, 1.0, %v3199_v24  ;;  %v511_v46 = vand.u32 4294901760, %v510_v43  ;;  %v519_v47 = vand.u32 4294901760, %v3335_v39  ;;  %3007 = vmatpush3.msra.mxu1 %v3268_v5 }
  0x8f   : > { %v405_v48 = vsel %vm391_vm0, %v3348_v44, 0  ;;  %v408_v49 = vsel %vm391_vm0, %v3351_v45, 0  ;;  %2956 = vmatmul.mubr.msk.f32.gmra.mxu1 %vm391_vm0, %v3325_v34  ;;  %v539_v51 = vand.u32 4294901760, %v3337_v40  ;;  %3060 = vmatprep.subr.mxu1 %v3266_v4  ;;  %v531_v0 = vand.u32 4294901760, %v530_v50 }
  0x90   : > { %v3365_v52 = vsub.f32 %v405_v48, %v405_v48  ;;  %v3367_v53 = vsub.f32 %v408_v49, %v408_v49  ;;  %2924 = vmatprep.mubr.f32.mxu0 %v511_v46  ;;  %v294_v54 = vpop.permute.xlu0 %293  ;;  %v298_v55 = vpop.permute.xlu1 %297  ;;  %2958 = vmatprep.mubr.msk.f32.mxu1 %vm391_vm0, %v3348_v44  ;;  %v520_v56 = vsub.f32 %v3335_v39, %v519_v47 }
  0x91   : > { %vm349_vm7 = vcmp.eq.s32.totalorder %v3299_v21, %v294_v54  ;;  %vm350_vm8 = vcmp.eq.s32.totalorder %v3299_v21, %v298_v55  ;;  %v540_v57 = vsub.f32 %v3337_v40, %v539_v51 }
  0x92   : > { %v3381_v58 = vsel %vm349_vm7, 1.0, %v3199_v24  ;;  %v3384_v59 = vsel %vm350_vm8, 1.0, %v3199_v24  ;;  %v521_v60 = vand.u32 4294901760, %v520_v56  ;;  %v549_v61 = vand.u32 4294901760, %v3365_v52 }
  0x93   : > { %v411_v62 = vsel %vm391_vm0, %v3381_v58, 0  ;;  %v414_v63 = vsel %vm391_vm0, %v3384_v59, 0  ;;  %2959 = vmatmul.mubr.msk.f32.gmra.mxu1 %vm391_vm0, %v3351_v45  ;;  %v559_v1 = vand.u32 4294901760, %v3367_v53  ;;  %v541_v14 = vand.u32 4294901760, %v540_v57 }
  0x94   : > { %v3395_v2 = vsub.f32 %v411_v62, %v411_v62  ;;  %v3397_v6 = vsub.f32 %v414_v63, %v414_v63  ;;  %2925 = vmatmul.mubr.f32.vlgmr.msra.gmra.mxu0 %v521_v60  ;;  %v305_v11 = vpop.permute.xlu0 %304  ;;  %v309_v12 = vpop.permute.xlu1 %308  ;;  %2961 = vmatprep.mubr.msk.f32.mxu1 %vm391_vm0, %v3381_v58  ;;  %v550_v13 = vsub.f32 %v3365_v52, %v549_v61 }
  0x95   : > { %2977 = vmatpush3.msra.mxu0 %v3273_v7  ;;  %2927 = vmatprep.mubr.f32.mxu0 %v531_v0  ;;  %vm351_vm9 = vcmp.eq.s32.totalorder %v3299_v21, %v305_v11  ;;  %vm352_vm10 = vcmp.eq.s32.totalorder %v3299_v21, %v309_v12  ;;  %v560_v15 = vsub.f32 %v3367_v53, %v559_v1 }
  0x96   : > { %v3411_v16 = vsel %vm351_vm9, 1.0, %v3199_v24  ;;  %v3414_v17 = vsel %vm352_vm10, 1.0, %v3199_v24  ;;  %v551_v18 = vand.u32 4294901760, %v550_v13  ;;  %v569_v19 = vand.u32 4294901760, %v3395_v2  ;;  %2978 = vmatprep.subr.mxu0 %v3276_v8 }
  0x97   : > { %v417_v7 = vsel %vm391_vm0, %v3411_v16, 0  ;;  %v420_v20 = vsel %vm391_vm0, %v3414_v17, 0  ;;  %2962 = vmatmul.mubr.msk.f32.gmra.mxu1 %vm391_vm0, %v3384_v59  ;;  %v579_v22 = vand.u32 4294901760, %v3397_v6  ;;  %2979 = vmatpush3.msra.mxu0 %v3276_v8  ;;  %v561_v8 = vand.u32 4294901760, %v560_v15 }
  0x98   : > { %v3426_v23 = vsub.f32 %v417_v7, %v417_v7  ;;  %v3428_v27 = vsub.f32 %v420_v20, %v420_v20  ;;  %2928 = vmatmul.mubr.f32.gmra.mxu0 %v541_v14  ;;  %v316_v28 = vpop.permute.xlu0 %315  ;;  %v320_v30 = vpop.permute.xlu1 %319  ;;  %2964 = vmatprep.mubr.msk.f32.mxu1 %vm391_vm0, %v3411_v16  ;;  %v570_v31 = vsub.f32 %v3395_v2, %v569_v19 }
  0x99   : > { %2930 = vmatprep.mubr.f32.mxu0 %v551_v18  ;;  %vm353_vm11 = vcmp.eq.s32.totalorder %v3299_v21, %v316_v28  ;;  %vm354_vm12 = vcmp.eq.s32.totalorder %v3299_v21, %v320_v30  ;;  %v580_v36 = vsub.f32 %v3397_v6, %v579_v22  ;;  %3032 = vmatprep.subr.mxu0 %v3281_v9 }
  0x9a   : > { %v3442_v37 = vsel %vm353_vm11, 1.0, %v3199_v24  ;;  %v3445_v41 = vsel %vm354_vm12, 1.0, %v3199_v24  ;;  %v571_v42 = vand.u32 4294901760, %v570_v31  ;;  %v589_v43 = vand.u32 4294901760, %v3426_v23 }
  0x9b   : > { %v423_v46 = vsel %vm391_vm0, %v3442_v37, 0  ;;  %v426_v48 = vsel %vm391_vm0, %v3445_v41, 0  ;;  %2965 = vmatmul.mubr.msk.f32.gmra.mxu1 %vm391_vm0, %v3414_v17  ;;  %v599_v49 = vand.u32 4294901760, %v3428_v27  ;;  %v581_v60 = vand.u32 4294901760, %v580_v36 }
  0x9c   : > { %v3455_v50 = vsub.f32 %v423_v46, %v423_v46  ;;  %v3457_v54 = vsub.f32 %v426_v48, %v426_v48  ;;  %2931 = vmatmul.mubr.f32.gmra.mxu0 %v561_v8  ;;  %v327_v55 = vpop.permute.xlu0 %326  ;;  %v331_v56 = vpop.permute.xlu1 %330  ;;  %2967 = vmatprep.mubr.msk.f32.mxu1 %vm391_vm0, %v3442_v37  ;;  %v590_v57 = vsub.f32 %v3426_v23, %v589_v43 }
  0x9d   : > { %2933 = vmatprep.mubr.f32.mxu0 %v571_v42  ;;  %vm355_vm13 = vcmp.eq.s32.totalorder %v3299_v21, %v327_v55  ;;  %vm356_vm14 = vcmp.eq.s32.totalorder %v3299_v21, %v331_v56  ;;  %v600_v62 = vsub.f32 %v3428_v27, %v599_v49 }
  0x9e   : > { %v3470_v63 = vsel %vm355_vm13, 1.0, %v3199_v24  ;;  %v3473_v0 = vsel %vm356_vm14, 1.0, %v3199_v24  ;;  %v591_v11 = vand.u32 4294901760, %v590_v57  ;;  %v609_v12 = vand.u32 4294901760, %v3455_v50 }
  0x9f   : > { %v429_v13 = vsel %vm391_vm0, %v3470_v63, 0  ;;  %v432_v14 = vsel %vm391_vm0, %v3473_v0, 0  ;;  %2968 = vmatmul.mubr.msk.f32.gmra.mxu1 %vm391_vm0, %v3445_v41  ;;  %v619_v15 = vand.u32 4294901760, %v3457_v54  ;;  %v601_v31 = vand.u32 4294901760, %v600_v62 }
  0xa0   : > { %v3483_v18 = vsub.f32 %v429_v13, %v429_v13  ;;  %v3485_v7 = vsub.f32 %v432_v14, %v432_v14  ;;  %2934 = vmatmul.mubr.f32.gmra.mxu0 %v581_v60  ;;  %v338_v20 = vpop.permute.xlu0 %337  ;;  %v342_v28 = vpop.permute.xlu1 %341  ;;  %2970 = vmatprep.mubr.msk.f32.mxu1 %vm391_vm0, %v3470_v63  ;;  %v610_v30 = vsub.f32 %v3455_v50, %v609_v12 }
  0xa1   : > { %2936 = vmatprep.mubr.f32.mxu0 %v591_v11  ;;  %vm357_vm15 = vcmp.eq.s32.totalorder %v3299_v21, %v338_v20  ;;  %vm358_vm1 = vcmp.eq.s32.totalorder %v3299_v21, %v342_v28  ;;  %v620_v8 = vsub.f32 %v3457_v54, %v619_v15 }
  0xa2   : > { %v3498_v36 = vsel %vm357_vm15, 1.0, %v3199_v24  ;;  %v3501_v42 = vsel %vm358_vm1, 1.0, %v3199_v24  ;;  %v611_v46 = vand.u32 4294901760, %v610_v30  ;;  %v629_v48 = vand.u32 4294901760, %v3483_v18 }
  0xa3   : > { %v435_v55 = vsel %vm391_vm0, %v3498_v36, 0  ;;  %v438_v21 = vsel %vm391_vm0, %v3501_v42, 0  ;;  %2971 = vmatmul.mubr.msk.f32.gmra.mxu1 %vm391_vm0, %v3473_v0  ;;  %v639_v56 = vand.u32 4294901760, %v3485_v7  ;;  %v621_v62 = vand.u32 4294901760, %v620_v8 }
  0xa4   : > { %v648_v57 = vsub.f32 %v435_v55, %v435_v55  ;;  %v658_v60 = vsub.f32 %v438_v21, %v438_v21  ;;  %2937 = vmatmul.mubr.f32.gmra.mxu0 %v601_v31  ;;  %2973 = vmatprep.mubr.msk.f32.mxu1 %vm391_vm0, %v3498_v36  ;;  %v630_v24 = vsub.f32 %v3483_v18, %v629_v48 }
  0xa5   : > { %2939 = vmatprep.mubr.f32.mxu0 %v611_v46  ;;  %v640_v13 = vsub.f32 %v3485_v7, %v639_v56 }
  0xa6   : > { %v631_v11 = vand.u32 4294901760, %v630_v24  ;;  %v649_v14 = vand.u32 4294901760, %v648_v57  ;;  %v659_v20 = vand.u32 4294901760, %v658_v60 }
  0xa7   : > { %2974 = vmatmul.mubr.msk.f32.gmra.mxu1 %vm391_vm0, %v3501_v42  ;;  %v641_v30 = vand.u32 4294901760, %v640_v13 }
  0xa8   : > { %2940 = vmatmul.mubr.f32.gmra.mxu0 %v621_v62  ;;  %3008 = vmatprep.mubr.f32.mxu1 %v509_v35  ;;  %v650_v28 = vsub.f32 %v648_v57, %v649_v14  ;;  %v660_v55 = vsub.f32 %v658_v60, %v659_v20 }
  0xa9   : > { %2942 = vmatprep.mubr.f32.mxu0 %v631_v11 }
  0xaa   : > { %v651_v31 = vand.u32 4294901760, %v650_v28  ;;  %v661_v8 = vand.u32 4294901760, %v660_v55 }
  0xab   : > { %3009 = vmatmul.mubr.f32.vlgmr.msra.gmra.mxu1 %v519_v47 }
  0xac   : > { %2943 = vmatmul.mubr.f32.gmra.mxu0 %v641_v30  ;;  %3011 = vmatprep.mubr.f32.mxu1 %v529_v38 }
  0xad   : > { %2945 = vmatprep.mubr.f32.mxu0 %v651_v31  ;;  %3061 = vmatpush3.msra.mxu1 %v3266_v4  ;;  %v1599_v4 = vld [vmem:[%s3828_s2 + $0x4] sm:$0xf] }
  0xae   : > { %3062 = vmatprep.subr.mxu1 %v3268_v5 }
  0xaf   : > { %3012 = vmatmul.mubr.f32.gmra.mxu1 %v539_v51 }
  0xb0   : > { %2946 = vmatmul.mubr.f32.gmra.mxu0 %v661_v8  ;;  %3014 = vmatprep.mubr.f32.mxu1 %v549_v61 }
  0xb1   : > { %2980 = vmatprep.mubr.f32.mxu0 %v3317_v32  ;;  %3063 = vmatpush3.msra.mxu1 %v3268_v5  ;;  %v1608_v5 = vsel %vm1606_vm2, %v1599_v4, 0 }
  0xb3   : > { %3015 = vmatmul.mubr.f32.gmra.mxu1 %v559_v1 }
  0xb4   : > { %2981 = vmatmul.mubr.f32.vlgmr.msra.gmra.mxu0 %v3335_v39  ;;  %3017 = vmatprep.mubr.f32.mxu1 %v569_v19 }
  0xb5   : > { %3033 = vmatpush3.msra.mxu0 %v3281_v9  ;;  %2983 = vmatprep.mubr.f32.mxu0 %v3315_v29  ;;  %v3629_v9 = vand.u32 4294901760, %v1608_v5 }
  0xb6   : > { %3034 = vmatprep.subr.mxu0 %v3284_v10 }
  0xb7   : > { %3018 = vmatmul.mubr.f32.gmra.mxu1 %v579_v22  ;;  %3035 = vmatpush3.msra.mxu0 %v3284_v10  ;;  %3838 = vst [vmem:[#allocation4_spill] sm:$0xff] %v3629_v9  ;;  %v3633_v10 = vsub.f32 %v1608_v5, %v3629_v9 }
  0xb8   : > { %2984 = vmatmul.mubr.f32.gmra.mxu0 %v3337_v40  ;;  %3020 = vmatprep.mubr.f32.mxu1 %v589_v43 }
  0xb9   : > { %2986 = vmatprep.mubr.f32.mxu0 %v3365_v52  ;;  %3088 = vmatprep.subr.mxu0 %v3629_v9  ;;  %3839 = vst [vmem:[#allocation5_spill] sm:$0xff] %v3633_v10 }
  0xbb   : > { %3021 = vmatmul.mubr.f32.gmra.mxu1 %v599_v49 }
  0xbc   : > { %2987 = vmatmul.mubr.f32.gmra.mxu0 %v3367_v53  ;;  %3023 = vmatprep.mubr.f32.mxu1 %v609_v12 }
  0xbd   : > { %2989 = vmatprep.mubr.f32.mxu0 %v3395_v2 }
  0xbf   : > { %3024 = vmatmul.mubr.f32.gmra.mxu1 %v619_v15 }
  0xc0   : > { %2990 = vmatmul.mubr.f32.gmra.mxu0 %v3397_v6  ;;  %3026 = vmatprep.mubr.f32.mxu1 %v629_v48 }
  0xc1   : > { %2992 = vmatprep.mubr.f32.mxu0 %v3426_v23 }
  0xc3   : > { %3027 = vmatmul.mubr.f32.gmra.mxu1 %v639_v56 }
  0xc4   : > { %2993 = vmatmul.mubr.f32.gmra.mxu0 %v3428_v27  ;;  %3029 = vmatprep.mubr.f32.mxu1 %v649_v14 }
  0xc5   : > { %2995 = vmatprep.mubr.f32.mxu0 %v3455_v50 }
  0xc7   : > { %3030 = vmatmul.mubr.f32.gmra.mxu1 %v659_v20 }
  0xc8   : > { %2996 = vmatmul.mubr.f32.gmra.mxu0 %v3457_v54  ;;  %3064 = vmatprep.mubr.msk.f32.mxu1 %vm391_vm0, %v3304_v25 }
  0xc9   : > { %2998 = vmatprep.mubr.f32.mxu0 %v3483_v18 }
  0xcb   : > { %3065 = vmatmul.mubr.msk.f32.vlgmr.msra.gmra.mxu1 %vm391_vm0, %v3322_v33 }
  0xcc   : > { %2999 = vmatmul.mubr.f32.gmra.mxu0 %v3485_v7  ;;  %3067 = vmatprep.mubr.msk.f32.mxu1 %vm391_vm0, %v3307_v26 }
  0xcd   : > { %3001 = vmatprep.mubr.f32.mxu0 %v648_v57 }
  0xcf   : > { %3068 = vmatmul.mubr.msk.f32.gmra.mxu1 %vm391_vm0, %v3325_v34 }
  0xd0   : > { %3002 = vmatmul.mubr.f32.gmra.mxu0 %v658_v60  ;;  %3070 = vmatprep.mubr.msk.f32.mxu1 %vm391_vm0, %v3348_v44 }
  0xd1   : > { %3036 = vmatprep.mubr.msk.f32.mxu0 %vm391_vm0, %v3304_v25  ;;  %v3637_v25 = vand.u32 4294901760, %v3633_v10 }
  0xd3   : > { %3071 = vmatmul.mubr.msk.f32.gmra.mxu1 %vm391_vm0, %v3351_v45  ;;  %3840 = vst [vmem:[#allocation6_spill] sm:$0xff] %v3637_v25 }
  0xd4   : > { %3037 = vmatmul.mubr.msk.f32.vlgmr.msra.gmra.mxu0 %vm391_vm0, %v3322_v33  ;;  %3073 = vmatprep.mubr.msk.f32.mxu1 %vm391_vm0, %v3381_v58 }
  0xd5   : > { %3039 = vmatprep.mubr.msk.f32.mxu0 %vm391_vm0, %v3307_v26  ;;  %3089 = vmatpush3.msra.mxu0 %v3629_v9  ;;  %v1730_v26 = vsub.f32 %v3633_v10, %v3637_v25 }
  0xd6   : > { %3098 = vmatprep.subr.mxu0 %v3633_v10 }
  0xd7   : > { %3074 = vmatmul.mubr.msk.f32.gmra.mxu1 %vm391_vm0, %v3384_v59  ;;  %v1731_v29 = vand.u32 4294901760, %v1730_v26 }
  0xd8   : > { %3040 = vmatmul.mubr.msk.f32.gmra.mxu0 %vm391_vm0, %v3325_v34  ;;  %3076 = vmatprep.mubr.msk.f32.mxu1 %vm391_vm0, %v3411_v16 }
  0xd9   : > { %3042 = vmatprep.mubr.msk.f32.mxu0 %vm391_vm0, %v3348_v44  ;;  %3093 = vmatprep.subr.mxu1 %v1731_v29 }
  0xda   : > { %3094 = vmatpush3.msra.mxu1 %v1731_v29 }
  0xdb   : > { %3077 = vmatmul.mubr.msk.f32.gmra.mxu1 %vm391_vm0, %v3414_v17  ;;  %3103 = vmatprep.subr.mxu1 %v3629_v9 }
  0xdc   : > { %3043 = vmatmul.mubr.msk.f32.gmra.mxu0 %vm391_vm0, %v3351_v45  ;;  %3079 = vmatprep.mubr.msk.f32.mxu1 %vm391_vm0, %v3442_v37 }
  0xdd   : > { %3045 = vmatprep.mubr.msk.f32.mxu0 %vm391_vm0, %v3381_v58 }
  0xdf   : > { %3080 = vmatmul.mubr.msk.f32.gmra.mxu1 %vm391_vm0, %v3445_v41 }
  0xe0   : > { %3046 = vmatmul.mubr.msk.f32.gmra.mxu0 %vm391_vm0, %v3384_v59  ;;  %3082 = vmatprep.mubr.msk.f32.mxu1 %vm391_vm0, %v3470_v63 }
  0xe1   : > { %3048 = vmatprep.mubr.msk.f32.mxu0 %vm391_vm0, %v3411_v16 }
  0xe3   : > { %3083 = vmatmul.mubr.msk.f32.gmra.mxu1 %vm391_vm0, %v3473_v0 }
  0xe4   : > { %3049 = vmatmul.mubr.msk.f32.gmra.mxu0 %vm391_vm0, %v3414_v17  ;;  %3085 = vmatprep.mubr.msk.f32.mxu1 %vm391_vm0, %v3498_v36 }
  0xe5   : > { %3051 = vmatprep.mubr.msk.f32.mxu0 %vm391_vm0, %v3442_v37 }
  0xe7   : > { %3086 = vmatmul.mubr.msk.f32.gmra.mxu1 %vm391_vm0, %v3501_v42 }
  0xe8   : > { %3052 = vmatmul.mubr.msk.f32.gmra.mxu0 %vm391_vm0, %v3445_v41 }
  0xe9   : > { %3054 = vmatprep.mubr.msk.f32.mxu0 %vm391_vm0, %v3470_v63 }
  0xec   : > { %3055 = vmatmul.mubr.msk.f32.gmra.mxu0 %vm391_vm0, %v3473_v0 }
  0xed   : > { %3057 = vmatprep.mubr.msk.f32.mxu0 %vm391_vm0, %v3498_v36 }
  0xf0   : > { %3058 = vmatmul.mubr.msk.f32.gmra.mxu0 %vm391_vm0, %v3501_v42  ;;  %vm1544_vm0 = vcmask 31744  }
 0x14b   : > { %v2954_v32 = vpop.f32.mrf.mxu1 }
 0x14d   : > { %v744_v33 = vpop.f32.mrf.mxu1 }
 0x14f   : > { %v2957_v34 = vpop.f32.mrf.mxu1 }
 0x151   : > { %v756_v35 = vpop.f32.mrf.mxu1 }
 0x153   : > { %v2960_v38 = vpop.f32.mrf.mxu1 }
 0x154   : > { %v2926_v39 = vpop.f32.mrf.mxu0 }
 0x155   : > { %v3643_v40 = vadd.f32 %v2954_v32, %v2926_v39  ;;  %v768_v44 = vpop.f32.mrf.mxu1 }
 0x156   : > { %v513_v45 = vpop.f32.mrf.mxu0 }
 0x157   : > { %v3645_v47 = vadd.f32 %v744_v33, %v513_v45  ;;  %v2963_v51 = vpop.f32.mrf.mxu1 }
 0x158   : > { %v2929_v52 = vpop.f32.mrf.mxu0 }
 0x159   : > { %v3647_v53 = vadd.f32 %v2957_v34, %v2929_v52  ;;  %v780_v58 = vpop.f32.mrf.mxu1 }
 0x15a   : > { %v533_v59 = vpop.f32.mrf.mxu0 }
 0x15b   : > { %v3649_v61 = vadd.f32 %v756_v35, %v533_v59  ;;  %v2966_v1 = vpop.f32.mrf.mxu1 }
 0x15c   : > { %v2932_v2 = vpop.f32.mrf.mxu0 }
 0x15d   : > { %v3651_v6 = vadd.f32 %v2960_v38, %v2932_v2  ;;  %v792_v16 = vpop.f32.mrf.mxu1 }
 0x15e   : > { %v553_v17 = vpop.f32.mrf.mxu0 }
 0x15f   : > { %v3653_v19 = vadd.f32 %v768_v44, %v553_v17  ;;  %v3655_v22 = vpop.f32.mrf.mxu1 }
 0x160   : > { %v2935_v23 = vpop.f32.mrf.mxu0 }
 0x161   : > { %v3657_v27 = vadd.f32 %v2963_v51, %v2935_v23  ;;  %v3659_v37 = vpop.f32.mrf.mxu1 }
 0x162   : > { %v573_v41 = vpop.f32.mrf.mxu0 }
 0x163   : > { %v3661_v43 = vadd.f32 %v780_v58, %v573_v41  ;;  %v3663_v49 = vpop.f32.mrf.mxu1 }
 0x164   : > { %v2938_v50 = vpop.f32.mrf.mxu0 }
 0x165   : > { %v3665_v54 = vadd.f32 %v2966_v1, %v2938_v50  ;;  %v3667_v63 = vpop.f32.mrf.mxu1 }
 0x166   : > { %v593_v0 = vpop.f32.mrf.mxu0 }
 0x167   : > { %v3669_v12 = vadd.f32 %v792_v16, %v593_v0  ;;  %v3671_v15 = vpop.f32.mrf.mxu1 }
 0x168   : > { %v3673_v18 = vpop.f32.mrf.mxu0 }
 0x169   : > { %v3675_v7 = vpop.f32.mrf.mxu1 }
 0x16a   : > { %3841 = vst [vmem:[#allocation7_spill] sm:$0xff] %v3675_v7  ;;  %v3677_v36 = vpop.f32.mrf.mxu0 }
 0x16b   : > { %v3010_v42 = vpop.f32.mrf.mxu1 }
 0x16c   : > { %v3679_v46 = vpop.f32.mrf.mxu0 }
 0x16d   : > { %v1090_v48 = vpop.f32.mrf.mxu1 }
 0x16e   : > { %v3681_v21 = vpop.f32.mrf.mxu0 }
 0x16f   : > { %v3013_v56 = vpop.f32.mrf.mxu1 }
 0x170   : > { %v3683_v57 = vpop.f32.mrf.mxu0 }
 0x171   : > { %v1106_v60 = vpop.f32.mrf.mxu1 }
 0x172   : > { %v3685_v24 = vpop.f32.mrf.mxu0 }
 0x173   : > { %3842 = vst [vmem:[#allocation8_spill] sm:$0xff] %v3685_v24  ;;  %v3016_v62 = vpop.f32.mrf.mxu1 }
 0x174   : > { %v2982_v11 = vpop.f32.mrf.mxu0 }
 0x175   : > { %v1122_v13 = vpop.f32.mrf.mxu1  ;;  %v918_v41 = vadd.f32 %v2982_v11, %v3643_v40 }
 0x176   : > { %v910_v14 = vpop.f32.mrf.mxu0 }
 0x177   : > { %v3687_v20 = vpop.f32.mrf.mxu1  ;;  %v911_v25 = vadd.f32 %v910_v14, %v3645_v47  ;;  %v1099_v3 = vadd.f32 %v3010_v42, %v918_v41 }
 0x178   : > { %v2985_v28 = vpop.f32.mrf.mxu0 }
 0x179   : > { %v3689_v30 = vpop.f32.mrf.mxu1  ;;  %v1091_v24 = vadd.f32 %v1090_v48, %v911_v25 }
 0x17a   : > { %v924_v31 = vpop.f32.mrf.mxu0 }
 0x17b   : > { %v3691_v55 = vpop.f32.mrf.mxu1 }
 0x17c   : > { %v2988_v8 = vpop.f32.mrf.mxu0 }
 0x17d   : > { %v3693_v4 = vpop.f32.mrf.mxu1 }
 0x17e   : > { %v938_v5 = vpop.f32.mrf.mxu0 }
 0x17f   : > { %v3695_v26 = vpop.f32.mrf.mxu1  ;;  %v939_v40 = vadd.f32 %v938_v5, %v3653_v19  ;;  %v811_v19 = vadd.f32 %v3655_v22, %v3673_v18 }
 0x180   : > { %v2991_v29 = vpop.f32.mrf.mxu0 }
 0x181   : > { %v3697_v32 = vpop.f32.mrf.mxu1  ;;  %v960_v47 = vadd.f32 %v2991_v29, %v3657_v27 }
 0x182   : > { %3843 = vst [vmem:[#allocation9_spill] sm:$0xff] %v3697_v32  ;;  %v952_v33 = vpop.f32.mrf.mxu0  ;;  %v925_v32 = vadd.f32 %v924_v31, %v3649_v61  ;;  %v1123_v61 = vadd.f32 %v1122_v13, %v939_v40 }
 0x183   : > { %v3699_v34 = vpop.f32.mrf.mxu1 }
 0x184   : > { %3844 = vst [vmem:[#allocation10_spill] sm:$0xff] %v3699_v34  ;;  %v2994_v35 = vpop.f32.mrf.mxu0 }
 0x185   : > { %v3701_v38 = vpop.f32.mrf.mxu1 }
 0x186   : > { %3845 = vst [vmem:[#allocation11_spill] sm:$0xff] %v3701_v38  ;;  %v966_v39 = vpop.f32.mrf.mxu0  ;;  %v946_v38 = vadd.f32 %v2988_v8, %v3651_v6 }
 0x187   : > { %v3703_v44 = vpop.f32.mrf.mxu1 }
 0x188   : > { %3846 = vst [vmem:[#allocation12_spill] sm:$0xff] %v3703_v44  ;;  %v2997_v45 = vpop.f32.mrf.mxu0  ;;  %v932_v44 = vadd.f32 %v2985_v28, %v3647_v53  ;;  %v1131_v41 = vadd.f32 %v3016_v62, %v946_v38  ;;  %v953_v53 = vadd.f32 %v952_v33, %v3661_v43  ;;  %v1147_v43 = vadd.f32 %v3687_v20, %v960_v47 }
 0x189   : > { %v3705_v51 = vpop.f32.mrf.mxu1 }
 0x18a   : > { %3847 = vst [vmem:[#allocation13_spill] sm:$0xff] %v3705_v51  ;;  %v3707_v52 = vpop.f32.mrf.mxu0  ;;  %v1115_v14 = vadd.f32 %v3013_v56, %v932_v44  ;;  %v1139_v22 = vadd.f32 %v3689_v30, %v953_v53  ;;  %v823_v30 = vadd.f32 %v3663_v49, %v3679_v46 }
 0x18b   : > { %v3066_v58 = vpop.f32.mrf.mxu1 }
 0x18c   : > { %v3709_v59 = vpop.f32.mrf.mxu0 }
 0x18d   : > { %v1450_v1 = vpop.f32.mrf.mxu1 }
 0x18e   : > { %v3711_v2 = vpop.f32.mrf.mxu0 }
 0x18f   : > { %3848 = vst [vmem:[#allocation14_spill] sm:$0xff] %v3711_v2  ;;  %v3069_v16 = vpop.f32.mrf.mxu1 }
 0x190   : > { %v3713_v17 = vpop.f32.mrf.mxu0 }
 0x191   : > { %3849 = vst [vmem:[#allocation15_spill] sm:$0xff] %v3713_v17  ;;  %v1462_v23 = vpop.f32.mrf.mxu1 }
 0x192   : > { %v3716_v50 = vpop.f32.mrf.mxu0 }
 0x193   : > { %3850 = vst [vmem:[#allocation16_spill] sm:$0xff] %v3716_v50  ;;  %v3072_v0 = vpop.f32.mrf.mxu1 }
 0x194   : > { %v3038_v10 = vpop.f32.mrf.mxu0 }
 0x195   : > { %v1474_v9 = vpop.f32.mrf.mxu1  ;;  %v1294_v7 = vadd.f32 %v3038_v10, %v1099_v3  ;;  %v1107_v10 = vadd.f32 %v1106_v60, %v925_v32  ;;  %v967_v60 = vadd.f32 %v966_v39, %v3669_v12 }
 0x196   : > { %v1287_v51 = vpop.f32.mrf.mxu0 }
 0x197   : > { %v3075_v34 = vpop.f32.mrf.mxu1  ;;  %v1288_v50 = vadd.f32 %v1287_v51, %v1091_v24  ;;  %v1457_v28 = vadd.f32 %v3066_v58, %v1294_v7  ;;  %v974_v24 = vadd.f32 %v2994_v35, %v3665_v54  ;;  %v805_v7 = vadd.f32 %v3659_v37, %v3677_v36 }
 0x198   : > { %v3041_v17 = vpop.f32.mrf.mxu0  ;;  %v988_v35 = vadd.f32 %v2997_v45, %v811_v19  ;;  %v1155_v45 = vadd.f32 %v3693_v4, %v967_v60 }
 0x199   : > { %v1486_v11 = vpop.f32.mrf.mxu1  ;;  %v1306_v3 = vadd.f32 %v3041_v17, %v1115_v14  ;;  %v1451_v31 = vadd.f32 %v1450_v1, %v1288_v50  ;;  %v1560_v5 = vsel %vm1544_vm0, %v1457_v28, -inf  ;;  %v1163_v37 = vadd.f32 %v3691_v55, %v974_v24  ;;  %v3855_v24 = vld [vmem:[#allocation10_spill] sm:$0xff] }
 0x19a   : > { %v1299_v2 = vpop.f32.mrf.mxu0  ;;  %v981_v58 = vadd.f32 %v3707_v52, %v805_v7  ;;  %v1002_v50 = vadd.f32 %v3709_v59, %v823_v30  ;;  %v1179_v46 = vadd.f32 %v3695_v26, %v988_v35  ;;  %v835_v14 = vadd.f32 %v3671_v15, %v3683_v57  ;;  %v3860_v30 = vld [vmem:[#allocation13_spill] sm:$0xff] }
 0x19b   : > { %v3078_v42 = vpop.f32.mrf.mxu1  ;;  %v1300_v56 = vadd.f32 %v1299_v2, %v1107_v10  ;;  %v1469_v18 = vadd.f32 %v3069_v16, %v1306_v3  ;;  %v1545_v38 = vsel %vm1544_vm0, %v1451_v31, -inf  ;;  %v3852_v3 = vld [vmem:[#allocation9_spill] sm:$0xff]  ;;  %v3853_v10 = vld [vmem:[#allocation8_spill] sm:$0xff] }
 0x19c   : > { %v3044_v6 = vpop.f32.mrf.mxu0  ;;  %v1171_v26 = vadd.f32 %v3852_v3, %v981_v58  ;;  %v1195_v31 = vadd.f32 %v3855_v24, %v1002_v50  ;;  %v3174_v24 = vld [vmem:[%s3259_s26 + $0x8] sm:$0xff] }
 0x19d   : > { %v1318_v25 = vadd.f32 %v3044_v6, %v1131_v41  ;;  %v1498_v48 = vpop.f32.mrf.mxu1  ;;  %v1463_v36 = vadd.f32 %v1462_v23, %v1300_v56  ;;  %v1561_v16 = vsel %vm1544_vm0, %v1469_v18, -inf }
 0x19e   : > { %v1311_v27 = vpop.f32.mrf.mxu0 }
 0x19f   : > { %v1481_v8 = vadd.f32 %v3072_v0, %v1318_v25  ;;  %v1312_v62 = vadd.f32 %v1311_v27, %v1123_v61  ;;  %v3081_v13 = vpop.f32.mrf.mxu1  ;;  %v1546_v52 = vsel %vm1544_vm0, %v1463_v36, -inf  ;;  %v3854_v25 = vld [vmem:[#allocation7_spill] sm:$0xff] }
 0x1a0   : > { %v3047_v29 = vpop.f32.mrf.mxu0  ;;  %v829_v61 = vadd.f32 %v3854_v25, %v3853_v10  ;;  %v3856_v27 = vld [vmem:[#allocation15_spill] sm:$0xff] }
 0x1a1   : > { %v1562_v54 = vsel %vm1544_vm0, %v1481_v8, -inf  ;;  %v1475_v32 = vadd.f32 %v1474_v9, %v1312_v62  ;;  %v1330_v33 = vadd.f32 %v3047_v29, %v1147_v43  ;;  %v1510_v9 = vpop.f32.mrf.mxu1  ;;  %v1016_v15 = vadd.f32 %v3856_v27, %v835_v14 }
 0x1a2   : > { %v1563_v20 = vmax.f32 %v1560_v5, %v1562_v54  ;;  %v1323_v44 = vpop.f32.mrf.mxu0  ;;  %v3858_v5 = vld [vmem:[#allocation16_spill] sm:$0xff] }
 0x1a3   : > { %v1547_v12 = vsel %vm1544_vm0, %v1475_v32, -inf  ;;  %v1493_v39 = vadd.f32 %v3075_v34, %v1330_v33  ;;  %v1324_v51 = vadd.f32 %v1323_v44, %v1139_v22  ;;  %v817_v34 = vadd.f32 %v3667_v63, %v3681_v21  ;;  %v3084_v28 = vpop.f32.mrf.mxu1  ;;  %v3859_v44 = vld [vmem:[#allocation12_spill] sm:$0xff] }
 0x1a4   : > { %v1548_v1 = vmax.f32 %v1545_v38, %v1547_v12  ;;  %v3050_v2 = vpop.f32.mrf.mxu0  ;;  %v1009_v29 = vadd.f32 %v3858_v5, %v829_v61 }
 0x1a5   : > { %v1564_v17 = vsel %vm1544_vm0, %v1493_v39, -inf  ;;  %v1487_v55 = vadd.f32 %v1486_v11, %v1324_v51  ;;  %v1342_v23 = vadd.f32 %v3050_v2, %v1163_v37  ;;  %v3851_v11 = vld [vmem:[#allocation14_spill] sm:$0xff]  ;;  %v1522_v62 = vpop.f32.mrf.mxu1 }
 0x1a6   : > { %v1565_v0 = vmax.f32 %v1561_v16, %v1564_v17  ;;  %v1335_v49 = vpop.f32.mrf.mxu0  ;;  %v995_v41 = vadd.f32 %v3851_v11, %v817_v34  ;;  %v1203_v58 = vadd.f32 %v3860_v30, %v1009_v29 }
 0x1a7   : > { %v1549_v40 = vsel %vm1544_vm0, %v1487_v55, -inf  ;;  %v1505_v4 = vadd.f32 %v3078_v42, %v1342_v23  ;;  %v1336_v47 = vadd.f32 %v1335_v49, %v1155_v45  ;;  %v3087_v37 = vpop.f32.mrf.mxu1 }
 0x1a8   : > { %v1550_v53 = vmax.f32 %v1546_v52, %v1549_v40  ;;  %v3053_v63 = vpop.f32.mrf.mxu0 }
 0x1a9   : > { %v1566_v21 = vsel %vm1544_vm0, %v1505_v4, -inf  ;;  %v1499_v59 = vadd.f32 %v1498_v48, %v1336_v47  ;;  %v1354_v6 = vadd.f32 %v3053_v63, %v1179_v46  ;;  %v3857_v48 = vld [vmem:[#allocation11_spill] sm:$0xff]  ;;  %v1534_v16 = vpop.f32.mrf.mxu1 }
 0x1aa   : > { %v1567_v19 = vmax.f32 %v1563_v20, %v1566_v21  ;;  %v1347_v42 = vpop.f32.mrf.mxu0  ;;  %v1187_v60 = vadd.f32 %v3857_v48, %v995_v41  ;;  %v3173_v21 = vld [vmem:[%s3259_s26] sm:$0xff] }
 0x1ab   : > { %v1551_v57 = vsel %vm1544_vm0, %v1499_v59, -inf  ;;  %v1517_v56 = vadd.f32 %v3081_v13, %v1354_v6  ;;  %v1348_v8 = vadd.f32 %v1347_v42, %v1171_v26  ;;  %v1211_v13 = vadd.f32 %v3859_v44, %v1016_v15 }
 0x1ac   : > { %v1552_v43 = vmax.f32 %v1548_v1, %v1551_v57  ;;  %v3056_v7 = vpop.f32.mrf.mxu0  ;;  %v2100_v26 = vsel %vm1544_vm0, %v3173_v21, 0 }
 0x1ad   : > { %v1568_v22 = vsel %vm1544_vm0, %v1517_v56, -inf  ;;  %v1511_v18 = vadd.f32 %v1510_v9, %v1348_v8  ;;  %v1366_v54 = vadd.f32 %v3056_v7, %v1195_v31  ;;  %v2174_v42 = vand.u32 4294901760, %v2100_v26  ;;  %v3862_v8 = vld [vmem:[#allocation4_spill] sm:$0xff] }
 0x1ae   : > { %v1569_v32 = vmax.f32 %v1565_v0, %v1568_v22  ;;  %v1359_v33 = vpop.f32.mrf.mxu0  ;;  %v1598_v0 = vld [vmem:[%s3828_s2] sm:$0xf]  ;;  %v2103_v31 = vsel %vm1544_vm0, %v3174_v24, 0 }
 0x1af   : > { %v1553_v35 = vsel %vm1544_vm0, %v1511_v18, -inf  ;;  %v1529_v38 = vadd.f32 %v3084_v28, %v1366_v54  ;;  %v1360_v20 = vadd.f32 %v1359_v33, %v1187_v60  ;;  %v2106_v4 = vsel %vm1606_vm2, %v1598_v0, 0  ;;  %v2771_v24 = vld [vmem:[%s3829_s3] ss:$0 sm:$0xff] }
 0x1b0   : > { %v1554_v36 = vmax.f32 %v1550_v53, %v1553_v35  ;;  %v3059_v12 = vpop.f32.mrf.mxu0  ;;  %v3776_v14 = vand.u32 4294901760, %v2106_v4  ;;  %v3861_v53 = vld [vmem:[#allocation3_spill] sm:$0xff]  ;;  %v2184_v56 = vand.u32 4294901760, %v2103_v31  ;;  %v3864_v35 = vld [vmem:[#allocation6_spill] sm:$0xff] }
 0x1b1   : > { %v1523_v39 = vadd.f32 %v1522_v62, %v1360_v20  ;;  %v1378_v51 = vadd.f32 %v3059_v12, %v1211_v13  ;;  %v1570_v2 = vsel %vm1544_vm0, %v1529_v38, -inf }
 0x1b2   : > { %v1371_v1 = vpop.f32.mrf.mxu0  ;;  %v1571_v34 = vmax.f32 %v1567_v19, %v1570_v2  ;;  %v3779_v11 = vsub.f32 %v2106_v4, %v3776_v14  ;;  %v2185_v5 = vsub.f32 %v2103_v31, %v2184_v56 }
 0x1b3   : > { %v1541_v9 = vadd.f32 %v3087_v37, %v1378_v51  ;;  %v1372_v45 = vadd.f32 %v1371_v1, %v1203_v58  ;;  %v1555_v17 = vsel %vm1544_vm0, %v1523_v39, -inf }
 0x1b4   : > { %v1556_v46 = vmax.f32 %v1552_v43, %v1555_v17  ;;  %v3785_v3 = vand.u32 4294901760, %v3779_v11  ;;  %v2175_v43 = vsub.f32 %v2100_v26, %v2174_v42  ;;  %v2186_v54 = vand.u32 4294901760, %v2185_v5 }
 0x1b5   : > { %v1572_v55 = vsel %vm1544_vm0, %v1541_v9, -inf  ;;  %v1535_v23 = vadd.f32 %v1534_v16, %v1372_v45 }
 0x1b6   : > { %v1573_v50 = vmax.f32 %v1569_v32, %v1572_v55  ;;  %v2228_v27 = vsub.f32 %v3779_v11, %v3785_v3  ;;  %v2176_v22 = vand.u32 4294901760, %v2175_v43  ;;  %v3863_v32 = vld [vmem:[#allocation5_spill] sm:$0xff]  ;;  %v2187_v38 = vsub.f32 %v2185_v5, %v2186_v54 }
 0x1b7   : > { %v1557_v49 = vsel %vm1544_vm0, %v1535_v23, -inf }
 0x1b8   : > { %v1574_v52 = vmax.f32 %v1571_v34, %v1573_v50  ;;  %v1558_v40 = vmax.f32 %v1554_v36, %v1557_v49  ;;  %v2229_v48 = vand.u32 4294901760, %v2228_v27  ;;  %v2177_v33 = vsub.f32 %v2175_v43, %v2176_v22 }
 0x1b9   : > { %v2188_v44 = vand.u32 4294901760, %v2187_v38 }
 0x1ba   : > { %1580 = vst.msk [vmem:[#allocation2 + $0x8] sm:$0xff] %vm1544_vm0, %v1574_v52  ;;  %v1559_v47 = vmax.f32 %v1556_v46, %v1558_v40  ;;  %v2178_v20 = vand.u32 4294901760, %v2177_v33 }
 0x1bc   : > { %1579 = vst.msk [vmem:[#allocation2] sm:$0xff] %vm1544_vm0, %v1559_v47 }
 0x1c1   : > { %v1595_v41 = vld [vmem:[#allocation2 + $0x8] sm:$0xff] }
 0x1c2   : > { %v1597_v28 = vsub.f32 %v1595_v41, %v3861_v53 }
 0x1c3   : > { %v1594_v63 = vld [vmem:[#allocation2] sm:$0xff] }
 0x1c4   : > { %v1596_v59 = vsub.f32 %v1594_v63, %v3173_v21  ;;  %v1604_v6 = vsel %vm1544_vm0, %v1597_v28, 0 }
 0x1c5   : > { %v1686_v10 = vand.u32 4294901760, %v1604_v6 }
 0x1c6   : > { %v1601_v25 = vsel %vm1544_vm0, %v1596_v59, 0 }
 0x1c7   : > { %v1676_v61 = vand.u32 4294901760, %v1601_v25  ;;  %v1687_v19 = vsub.f32 %v1604_v6, %v1686_v10 }
 0x1c9   : > { %3095 = vmatprep.mubr.f32.mxu1 %v1676_v61  ;;  %v1677_v15 = vsub.f32 %v1601_v25, %v1676_v61  ;;  %v1688_v57 = vand.u32 4294901760, %v1687_v19 }
 0x1ca   : > { %3096 = vmatmul.mubr.f32.vlgmr.msra.gmra.mxu1 %v1686_v10 }
 0x1cb   : > { %3104 = vmatpush3.msra.mxu1 %v3862_v8  ;;  %v1678_v62 = vand.u32 4294901760, %v1677_v15  ;;  %v1689_v7 = vsub.f32 %v1687_v19, %v1688_v57 }
 0x1cc   : > { %3113 = vmatprep.subr.mxu1 %v3862_v8 }
 0x1cd   : > { %3105 = vmatprep.mubr.f32.mxu1 %v1678_v62  ;;  %v1679_v60 = vsub.f32 %v1677_v15, %v1678_v62  ;;  %v1690_v18 = vand.u32 4294901760, %v1689_v7 }
 0x1ce   : > { %3106 = vmatmul.mubr.f32.vlgmr.msra.gmra.mxu1 %v1688_v57 }
 0x1cf   : > { %3115 = vmatprep.mubr.f32.mxu1 %v1676_v61  ;;  %v1680_v29 = vand.u32 4294901760, %v1679_v60  ;;  %3114 = vmatpush3.msra.mxu1 %v3862_v8 }
 0x1d0   : > { %3123 = vmatprep.subr.mxu1 %v2229_v48 }
 0x1d1   : > { %3090 = vmatprep.mubr.f32.mxu0 %v1680_v29 }
 0x1d2   : > { %3091 = vmatmul.mubr.f32.vlgmr.msra.gmra.mxu0 %v1690_v18  ;;  %3116 = vmatmul.mubr.f32.vlgmr.msra.gmra.mxu1 %v1686_v10 }
 0x1d3   : > { %3099 = vmatpush3.msra.mxu0 %v3863_v32  ;;  %3100 = vmatprep.mubr.f32.mxu0 %v1677_v15 }
 0x1d4   : > { %3108 = vmatprep.subr.mxu0 %v3864_v35  ;;  %3124 = vmatpush3.msra.mxu1 %v2229_v48 }
 0x1d5   : > { %3125 = vmatprep.mubr.f32.mxu1 %v2174_v42  ;;  %3133 = vmatprep.subr.mxu1 %v3776_v14 }
 0x1d6   : > { %3101 = vmatmul.mubr.f32.vlgmr.msra.gmra.mxu0 %v1687_v19  ;;  %3126 = vmatmul.mubr.f32.vlgmr.msra.gmra.mxu1 %v2184_v56 }
 0x1d7   : > { %3109 = vmatpush3.msra.mxu0 %v3864_v35  ;;  %3110 = vmatprep.mubr.f32.mxu0 %v1676_v61 }
 0x1d8   : > { %3118 = vmatprep.subr.mxu0 %v3776_v14  ;;  %3134 = vmatpush3.msra.mxu1 %v3776_v14 }
 0x1d9   : > { %3135 = vmatprep.mubr.f32.mxu1 %v2176_v22  ;;  %3143 = vmatprep.subr.mxu1 %v3776_v14 }
 0x1da   : > { %3111 = vmatmul.mubr.f32.vlgmr.msra.gmra.mxu0 %v1686_v10  ;;  %3136 = vmatmul.mubr.f32.vlgmr.msra.gmra.mxu1 %v2186_v54 }
 0x1db   : > { %3119 = vmatpush3.msra.mxu0 %v3776_v14  ;;  %3120 = vmatprep.mubr.f32.mxu0 %v2178_v20 }
 0x1dc   : > { %3128 = vmatprep.subr.mxu0 %v3779_v11  ;;  %3144 = vmatpush3.msra.mxu1 %v3776_v14 }
 0x1dd   : > { %3145 = vmatprep.mubr.f32.mxu1 %v2174_v42 }
 0x1de   : > { %3121 = vmatmul.mubr.f32.vlgmr.msra.gmra.mxu0 %v2188_v44  ;;  %3146 = vmatmul.mubr.f32.vlgmr.msra.gmra.mxu1 %v2184_v56 }
 0x1df   : > { %3129 = vmatpush3.msra.mxu0 %v3779_v11  ;;  %3130 = vmatprep.mubr.f32.mxu0 %v2175_v43 }
 0x1e0   : > { %3138 = vmatprep.subr.mxu0 %v3785_v3 }
 0x1e2   : > { %3131 = vmatmul.mubr.f32.vlgmr.msra.gmra.mxu0 %v2185_v5 }
 0x1e3   : > { %3139 = vmatpush3.msra.mxu0 %v3785_v3  ;;  %3140 = vmatprep.mubr.f32.mxu0 %v2174_v42 }
 0x1e6   : > { %3141 = vmatmul.mubr.f32.vlgmr.msra.gmra.mxu0 %v2184_v56 }
 0x28a   : > { %v3097_v13 = vpop.f32.mrf.mxu1 }
 0x28c   : > { %v1768_v37 = vpop.f32.mrf.mxu1 }
 0x28e   : > { %v3107_v36 = vpop.f32.mrf.mxu1 }
 0x290   : > { %v1929_v12 = vpop.f32.mrf.mxu1 }
 0x292   : > { %v3092_v39 = vpop.f32.mrf.mxu0  ;;  %v3117_v51 = vpop.f32.mrf.mxu1 }
 0x293   : > { %v1775_v1 = vadd.f32 %v3097_v13, %v3092_v39 }
 0x294   : > { %v1682_v30 = vpop.f32.mrf.mxu0  ;;  %v2089_v58 = vpop.f32.mrf.mxu1 }
 0x295   : > { %v1769_v45 = vadd.f32 %v1768_v37, %v1682_v30 }
 0x296   : > { %v3102_v2 = vpop.f32.mrf.mxu0  ;;  %v3127_v9 = vpop.f32.mrf.mxu1 }
 0x297   : > { %v1856_v16 = vadd.f32 %v3102_v2, %v1775_v1 }
 0x298   : > { %v1848_v17 = vpop.f32.mrf.mxu0  ;;  %v2266_v50 = vpop.f32.mrf.mxu1 }
 0x299   : > { %v1849_v55 = vadd.f32 %v1848_v17, %v1769_v45  ;;  %v1938_v23 = vadd.f32 %v3107_v36, %v1856_v16 }
 0x29a   : > { %v3112_v34 = vpop.f32.mrf.mxu0  ;;  %v3137_v47 = vpop.f32.mrf.mxu1 }
 0x29b   : > { %v2018_v0 = vadd.f32 %v3112_v34, %v1938_v23  ;;  %v1930_v49 = vadd.f32 %v1929_v12, %v1849_v55 }
 0x29c   : > { %v2011_v46 = vpop.f32.mrf.mxu0  ;;  %v2427_v21 = vpop.f32.mrf.mxu1 }
 0x29d   : > { %v2012_v52 = vadd.f32 %v2011_v46, %v1930_v49  ;;  %v2096_v40 = vadd.f32 %v3117_v51, %v2018_v0 }
 0x29e   : > { %v3122_v4 = vpop.f32.mrf.mxu0  ;;  %v3147_v61 = vpop.f32.mrf.mxu1 }
 0x29f   : > { %v2191_v14 = vadd.f32 %v3122_v4, %v2096_v40  ;;  %v2090_v11 = vadd.f32 %v2089_v58, %v2012_v52 }
 0x2a0   : > { %v2180_v41 = vpop.f32.mrf.mxu0  ;;  %v2587_v57 = vpop.f32.mrf.mxu1 }
 0x2a1   : > { %v2273_v53 = vadd.f32 %v3127_v9, %v2191_v14  ;;  %v2181_v28 = vadd.f32 %v2180_v41, %v2090_v11 }
 0x2a2   : > { %v3132_v63 = vpop.f32.mrf.mxu0 }
 0x2a3   : > { %v2267_v59 = vadd.f32 %v2266_v50, %v2181_v28  ;;  %v2354_v6 = vadd.f32 %v3132_v63, %v2273_v53 }
 0x2a4   : > { %v2346_v3 = vpop.f32.mrf.mxu0 }
 0x2a5   : > { %v2436_v26 = vadd.f32 %v3137_v47, %v2354_v6  ;;  %v2347_v10 = vadd.f32 %v2346_v3, %v2267_v59 }
 0x2a6   : > { %v3142_v25 = vpop.f32.mrf.mxu0 }
 0x2a7   : > { %v2428_v19 = vadd.f32 %v2427_v21, %v2347_v10  ;;  %v2516_v42 = vadd.f32 %v3142_v25, %v2436_v26 }
 0x2a8   : > { %v2509_v31 = vpop.f32.mrf.mxu0 }
 0x2a9   : > { %v2594_v27 = vadd.f32 %v3147_v61, %v2516_v42  ;;  %v2510_v15 = vadd.f32 %v2509_v31, %v2428_v19 }
 0x2ab   : > { %v2605_v56 = vadd.f32 %v2771_v24, %v2594_v27  ;;  %v2588_v8 = vadd.f32 %v2587_v57, %v2510_v15 }
 0x2ad   : > { %v2607_v62 = vmax.f32 %v2605_v56, 0.0  ;;  %v2604_v43 = vadd.f32 %v2771_v24, %v2588_v8 }
 0x2af   : > { %2610 = vst.msk [vmem:[%s242_s9 + $0x8] sm:$0xff] %vm2608_vm3, %v2607_v62  ;;  %v2606_v7 = vmax.f32 %v2604_v43, 0.0 }
 0x2b1   : > { %2609 = vst.msk [vmem:[%s242_s9] sm:$0xff] %vm2608_vm3, %v2606_v7 }
 0x2b2 PF: > { %s14_s17 = sadd.s32 1, %s3197_s17   ;;  %s3865_s15 = smov %s3193_s16 }
 0x2b3   : > { %p11_p5 = scmp.ge.s32.totalorder %s14_s17, 4   ;;  %s3866_s16 = smov %s3868_s18 }
 0x2b5   :  { %13 = sbr.rel (!%p11_p5) target bundleno = 2 (0x2), region = 81 }

</bundles_post_ra>
